<compile_context>
chip_gen: v6e
topology: v6e:2x2x1
jax: 0.10.0
libtpu: 0.0.40
codegen_flags: <defaults>
</compile_context>

<pallas_src>
import functools
import math

import jax
import jax.numpy as jnp
from jax import lax
from jax.experimental import pallas as pl
from jax.experimental.pallas import tpu as pltpu

_VMEM_LIMIT = 48 * 1024 * 1024  # safe on v5e/v6e (128 MiB) and v7x (64 MiB)


def _tile(dim, target):
    """Tile size: whole dim when small, `target` when it divides evenly,
    otherwise fall back to the whole dim (keeps blocks (8,128)-legal)."""
    if dim <= target or dim % target != 0:
        return dim
    return target


# ---------------- Fused multi-matmul (linear projection) kernel ------------- #
def _multi_linear_kernel(*refs, n_mats):
    """n_mats independent tiled matmuls y_p = x_p @ w_p + b_p sharing one grid.

    refs = x_0..x_{P-1}, w_0.., b_0.., o_0.., acc_0.. (f32 VMEM scratch).
    Grid is (M-tiles, N-tiles, K-tiles); the K reduction is the last axis.
    """
    xs = refs[0:n_mats]
    ws = refs[n_mats:2 * n_mats]
    bs = refs[2 * n_mats:3 * n_mats]
    outs = refs[3 * n_mats:4 * n_mats]
    accs = refs[4 * n_mats:5 * n_mats]
    k = pl.program_id(2)

    @pl.when(k == 0)
    def _():
        for acc in accs:
            acc[...] = jnp.zeros_like(acc)

    for p in range(n_mats):
        accs[p][...] += jnp.dot(xs[p][...], ws[p][...],
                                preferred_element_type=jnp.float32)

    @pl.when(k == pl.num_programs(2) - 1)
    def _():
        for p in range(n_mats):
            outs[p][...] = (accs[p][...] + bs[p][...]).astype(outs[p].dtype)


def multi_linear(xs, ws, bs, *, tm=256, tn=256, tk=512):
    """Compute [x @ w + b for (x, w, b) in zip(xs, ws, bs)] in ONE pallas_call."""
    n_mats = len(xs)
    M, K = xs[0].shape
    N = ws[0].shape[1]
    for x, w, b in zip(xs, ws, bs):
        assert x.shape == (M, K) and w.shape == (K, N) and b.shape == (N,)

    tm, tn, tk = _tile(M, tm), _tile(N, tn), _tile(K, tk)
    grid = (M // tm, N // tn, K // tk)

    x_spec = pl.BlockSpec((tm, tk), lambda i, j, k: (i, k))
    w_spec = pl.BlockSpec((tk, tn), lambda i, j, k: (k, j))
    b_spec = pl.BlockSpec((1, tn), lambda i, j, k: (0, j))
    o_spec = pl.BlockSpec((tm, tn), lambda i, j, k: (i, j))

    cost = pl.CostEstimate(
        flops=2 * n_mats * M * N * K + n_mats * M * N,
        transcendentals=0,
        bytes_accessed=4 * n_mats * (M * K + K * N + M * N + N),
    )
    outs = pl.pallas_call(
        functools.partial(_multi_linear_kernel, n_mats=n_mats),
        out_shape=tuple(jax.ShapeDtypeStruct((M, N), x.dtype) for x in xs),
        grid=grid,
        in_specs=[x_spec] * n_mats + [w_spec] * n_mats + [b_spec] * n_mats,
        out_specs=tuple(o_spec for _ in range(n_mats)),
        scratch_shapes=[pltpu.VMEM((tm, tn), jnp.float32)] * n_mats,
        compiler_params=pltpu.CompilerParams(
            dimension_semantics=("parallel", "parallel", "arbitrary"),
            vmem_limit_bytes=_VMEM_LIMIT,
        ),
        cost_estimate=cost,
    )(*xs, *ws, *[b.reshape(1, N) for b in bs])
    return list(outs)


# ----------------------------- Attention kernel ----------------------------- #
def _head_group_size(H, E, Dv):
    """Heads per attention block: all H heads when the packed lane width is
    small, otherwise the smallest head group whose lane widths (G*E, G*Dv)
    are multiples of 128 (lane-dense DMA / unmasked stores)."""
    if H * max(E, Dv) <= 512:
        return H
    for G in range(1, H + 1):
        if H % G == 0 and (G * E) % 128 == 0 and (G * Dv) % 128 == 0:
            return G
    return H


def _attention_kernel(q_ref, k_ref, v_ref, o_ref, a_ref, *, heads, scale):
    """Full attention for one (batch, head-group, L-tile) block.

    q_ref: (1, tl, G*E), k_ref: (1, S, G*E), v_ref: (1, S, G*Dv)
    o_ref: (1, tl, G*Dv), a_ref: (1, G, tl, S)
    """
    G = heads
    E = q_ref.shape[2] // G
    Dv = v_ref.shape[2] // G

    q = q_ref[0] * scale          # fold 1/sqrt(E) into the small q tile
    k = k_ref[0]
    v = v_ref[0]

    for g in range(G):
        qg = q[:, g * E:(g + 1) * E]                       # (tl, E)
        kg = k[:, g * E:(g + 1) * E]                       # (S, E)
        vg = v[:, g * Dv:(g + 1) * Dv]                     # (S, Dv)
        # q @ k^T without materializing a transposed copy of k.
        s = lax.dot_general(qg, kg, (((1,), (1,)), ((), ())),
                            preferred_element_type=jnp.float32)  # (tl, S)
        s = s - jnp.max(s, axis=-1, keepdims=True)
        p = jnp.exp(s)
        attn = p * pl.reciprocal(jnp.sum(p, axis=-1, keepdims=True), approx=True)
        ctx = jnp.dot(attn, vg, preferred_element_type=jnp.float32)  # (tl, Dv)
        a_ref[0, g] = attn.astype(a_ref.dtype)
        o_ref[0, :, g * Dv:(g + 1) * Dv] = ctx.astype(o_ref.dtype)


def full_attention(q, k, v, *, n_heads):
    """q: (B, L, H*E), k: (B, S, H*E), v: (B, S, H*Dv)
       -> out: (B, L, H*Dv), attn: (B, H, L, S)."""
    B, L, HE = q.shape
    _, S, _ = k.shape
    HDv = v.shape[2]
    H = n_heads
    E, Dv = HE // H, HDv // H
    G = _head_group_size(H, E, Dv)
    n_g = H // G
    tl = _tile(L, 256)
    grid = (B, n_g, L // tl)
    scale = 1.0 / math.sqrt(E)

    cost = pl.CostEstimate(
        flops=2 * B * H * L * S * (E + Dv) + 5 * B * H * L * S,
        transcendentals=B * H * L * S + B * H * L,
        bytes_accessed=4 * (B * L * HE + B * S * HE + B * S * HDv
                            + B * L * HDv + B * H * L * S),
    )
    out, attn = pl.pallas_call(
        functools.partial(_attention_kernel, heads=G, scale=scale),
        out_shape=(
            jax.ShapeDtypeStruct((B, L, HDv), q.dtype),
            jax.ShapeDtypeStruct((B, H, L, S), jnp.float32),
        ),
        grid=grid,
        in_specs=[
            pl.BlockSpec((1, tl, G * E), lambda b, g, l: (b, l, g)),
            pl.BlockSpec((1, S, G * E), lambda b, g, l: (b, 0, g)),
            pl.BlockSpec((1, S, G * Dv), lambda b, g, l: (b, 0, g)),
        ],
        out_specs=(
            pl.BlockSpec((1, tl, G * Dv), lambda b, g, l: (b, l, g)),
            pl.BlockSpec((1, G, tl, S), lambda b, g, l: (b, g, l, 0)),
        ),
        compiler_params=pltpu.CompilerParams(
            dimension_semantics=("parallel", "parallel", "parallel"),
            vmem_limit_bytes=_VMEM_LIMIT,
        ),
        cost_estimate=cost,
    )(q, k, v)
    return out, attn


# ------------------------------ Parameter init ------------------------------ #
def init_params(key, d_model, n_heads, d_keys=None, d_values=None):
    d_keys = d_keys or d_model // n_heads
    d_values = d_values or d_model // n_heads
    ks = jax.random.split(key, 8)

    def lin(kw, kb, fan_in, fan_out):
        bound = 1.0 / math.sqrt(fan_in)  # PyTorch nn.Linear default init
        w = jax.random.uniform(kw, (fan_in, fan_out), jnp.float32, -bound, bound)
        b = jax.random.uniform(kb, (fan_out,), jnp.float32, -bound, bound)
        return w, b

    return {
        "q": lin(ks[0], ks[1], d_model, d_keys * n_heads),
        "k": lin(ks[2], ks[3], d_model, d_keys * n_heads),
        "v": lin(ks[4], ks[5], d_model, d_values * n_heads),
        "o": lin(ks[6], ks[7], d_values * n_heads, d_model),
    }


# ------------------------------- Forward pass ------------------------------- #
def cross_attention_forward(params, queries, keys, values, indexq, indexk,
                            attn_mask, *, n_heads):
    del indexq, indexk, attn_mask  # TODO(synk): see note at top of file.
    B, L, d_model = queries.shape
    _, S, _ = keys.shape
    H = n_heads

    wq, bq = params["q"]
    wk, bk = params["k"]
    wv, bv = params["v"]
    wo, bo = params["o"]

    xq = queries.reshape(B * L, d_model)
    xk = keys.reshape(B * S, d_model)
    xv = values.reshape(B * S, d_model)

    # Fused Q/K/V projection: one pallas_call when shapes line up
    # (cross attention with L != S falls back to q-alone + fused k/v).
    if L == S and wq.shape == wk.shape == wv.shape:
        q2, k2, v2 = multi_linear([xq, xk, xv], [wq, wk, wv], [bq, bk, bv])
    else:
        (q2,) = multi_linear([xq], [wq], [bq])
        if wk.shape == wv.shape:
            k2, v2 = multi_linear([xk, xv], [wk, wv], [bk, bv])
        else:
            (k2,) = multi_linear([xk], [wk], [bk])
            (v2,) = multi_linear([xv], [wv], [bv])

    q3 = q2.reshape(B, L, -1)   # (B, L, H*E) - no head transpose in the wrapper
    k3 = k2.reshape(B, S, -1)
    v3 = v2.reshape(B, S, -1)

    ctx, attn = full_attention(q3, k3, v3, n_heads=H)   # (B, L, H*Dv)

    (out2,) = multi_linear([ctx.reshape(B * L, -1)], [wo], [bo])
    return out2.reshape(B, L, d_model), attn


# -------------------------------- Reference --------------------------------- #
def _reference(params, queries, keys, values, n_heads):
    B, L, d_model = queries.shape
    _, S, _ = keys.shape
    H = n_heads
    wq, bq = params["q"]
    wk, bk = params["k"]
    wv, bv = params["v"]
    wo, bo = params["o"]
    q = (queries @ wq + bq).reshape(B, L, H, -1)
    k = (keys @ wk + bk).reshape(B, S, H, -1)
    v = (values @ wv + bv).reshape(B, S, H, -1)
    E = q.shape[-1]
    scores = jnp.einsum("blhe,bshe->bhls", q, k) / math.sqrt(E)
    attn = jax.nn.softmax(scores, axis=-1)
    out = jnp.einsum("bhls,bshd->blhd", attn, v).reshape(B, L, -1)
    return out @ wo + bo, attn


# ----------------------------------- Main ------------------------------------ #
if __name__ == "__main__":
    d_model, n_heads = 32, 4
    B, L, S = 2, 8, 8

    key = jax.random.PRNGKey(0)
    k1, k2, k3, kp = jax.random.split(key, 4)
    queries = jax.random.normal(k1, (B, L, d_model), jnp.float32)
    keys = jax.random.normal(k2, (B, S, d_model), jnp.float32)
    values = jax.random.normal(k3, (B, S, d_model), jnp.float32)
    params = init_params(kp, d_model, n_heads)

    fwd = jax.jit(functools.partial(cross_attention_forward, n_heads=n_heads))
    out, attn = fwd(params, queries, keys, values, None, None, None)
    jax.block_until_ready((out, attn))

    ref_out, ref_attn = _reference(params, queries, keys, values, n_heads)
    assert out.shape == (B, L, d_model) and attn.shape == (B, n_heads, L, S)
    # Tolerance accommodates the EUP approximate reciprocal in the softmax.
    assert jnp.allclose(out, ref_out, atol=5e-3, rtol=5e-3), \
        float(jnp.max(jnp.abs(out - ref_out)))
    assert jnp.allclose(attn, ref_attn, atol=5e-3, rtol=5e-3), \
        float(jnp.max(jnp.abs(attn - ref_attn)))

    print("KERNEL_OK")
</pallas_src>

<mosaic_0001>
module attributes {stable_mosaic.version = 11 : i64} {
  func.func @_multi_linear_kernel(%arg0: i32, %arg1: i32, %arg2: i32, %arg3: memref<16x32xf32, #tpu.memory_space<vmem>>, %arg4: memref<32x32xf32, #tpu.memory_space<vmem>>, %arg5: memref<1x32xf32, #tpu.memory_space<vmem>>, %arg6: memref<16x32xf32, #tpu.memory_space<vmem>>, %arg7: memref<16x32xf32, #tpu.memory_space<vmem>>) attributes {dimension_semantics = [#tpu.dimension_semantics<parallel>, #tpu.dimension_semantics<parallel>, #tpu.dimension_semantics<arbitrary>], iteration_bounds = array<i64: 1, 1, 1>, scalar_prefetch = 0 : i64, scratch_operands = 1 : i64, tpu.core_type = #tpu.core_type<tc>, window_params = [{transform_indices = @transform_0, window_bounds = array<i64: 16, 32>}, {transform_indices = @transform_1, window_bounds = array<i64: 32, 32>}, {transform_indices = @transform_2, window_bounds = array<i64: 1, 32>}, {transform_indices = @transform_3, window_bounds = array<i64: 16, 32>}]} {
    %c0_i32 = arith.constant 0 : i32
    %0 = arith.cmpi eq, %arg2, %c0_i32 : i32
    %1 = arith.extui %0 : i1 to i32
    %c0_i32_0 = arith.constant 0 : i32
    %2 = arith.cmpi ne, %1, %c0_i32_0 : i32
    scf.if %2 {
      %cst_10 = arith.constant 0.000000e+00 : f32
      %12 = vector.broadcast %cst_10 : f32 to vector<16x32xf32>
      %c0_11 = arith.constant 0 : index
      %c0_12 = arith.constant 0 : index
      %13 = vector.load %arg7[%c0_11, %c0_12] : memref<16x32xf32, #tpu.memory_space<vmem>>, vector<16x32xf32>
      tpu.vector_store %arg7[%c0_11, %c0_12], %12 {strides = array<i32>} : memref<16x32xf32, #tpu.memory_space<vmem>>, vector<16x32xf32>,
    } else {
    }
    %c0 = arith.constant 0 : index
    %c0_1 = arith.constant 0 : index
    %3 = vector.load %arg7[%c0, %c0_1] : memref<16x32xf32, #tpu.memory_space<vmem>>, vector<16x32xf32>
    %c0_2 = arith.constant 0 : index
    %c0_3 = arith.constant 0 : index
    %4 = vector.load %arg3[%c0_2, %c0_3] : memref<16x32xf32, #tpu.memory_space<vmem>>, vector<16x32xf32>
    %c0_4 = arith.constant 0 : index
    %c0_5 = arith.constant 0 : index
    %5 = vector.load %arg4[%c0_4, %c0_5] : memref<32x32xf32, #tpu.memory_space<vmem>>, vector<32x32xf32>
    %cst = arith.constant dense<0.000000e+00> : vector<16x32xf32>
    %6 = tpu.matmul %4, %5, %cst {dimension_numbers = #tpu.dot_dimension_numbers<[1], [0], [0], [1], [0, 0, 1, 1], [], []>} : vector<16x32xf32>, vector<32x32xf32>, vector<16x32xf32> -> vector<16x32xf32>
    %7 = arith.addf %3, %6 : vector<16x32xf32>
    %c0_6 = arith.constant 0 : index
    %c0_7 = arith.constant 0 : index
    %8 = vector.load %arg7[%c0_6, %c0_7] : memref<16x32xf32, #tpu.memory_space<vmem>>, vector<16x32xf32>
    tpu.vector_store %arg7[%c0_6, %c0_7], %7 {strides = array<i32>} : memref<16x32xf32, #tpu.memory_space<vmem>>, vector<16x32xf32>,
    %c0_i32_8 = arith.constant 0 : i32
    %9 = arith.cmpi eq, %arg2, %c0_i32_8 : i32
    %10 = arith.extui %9 : i1 to i32
    %c0_i32_9 = arith.constant 0 : i32
    %11 = arith.cmpi ne, %10, %c0_i32_9 : i32
    scf.if %11 {
      %c0_10 = arith.constant 0 : index
      %c0_11 = arith.constant 0 : index
      %12 = vector.load %arg7[%c0_10, %c0_11] : memref<16x32xf32, #tpu.memory_space<vmem>>, vector<16x32xf32>
      %c0_12 = arith.constant 0 : index
      %c0_13 = arith.constant 0 : index
      %13 = vector.load %arg5[%c0_12, %c0_13] : memref<1x32xf32, #tpu.memory_space<vmem>>, vector<1x32xf32>
      %14 = vector.broadcast %13 : vector<1x32xf32> to vector<16x32xf32>
      %15 = arith.addf %12, %14 : vector<16x32xf32>
      %c0_14 = arith.constant 0 : index
      %c0_15 = arith.constant 0 : index
      %16 = vector.load %arg6[%c0_14, %c0_15] : memref<16x32xf32, #tpu.memory_space<vmem>>, vector<16x32xf32>
      tpu.vector_store %arg6[%c0_14, %c0_15], %15 {strides = array<i32>} : memref<16x32xf32, #tpu.memory_space<vmem>>, vector<16x32xf32>,
    } else {
    }
    return
  }
  func.func @transform_0(%arg0: i32, %arg1: i32, %arg2: i32) -> (i32, i32) {
    %c0_i32 = arith.constant 0 : i32
    return %arg0, %arg2 : i32, i32
  }
  func.func @transform_1(%arg0: i32, %arg1: i32, %arg2: i32) -> (i32, i32) {
    %c0_i32 = arith.constant 0 : i32
    return %arg2, %arg1 : i32, i32
  }
  func.func @transform_2(%arg0: i32, %arg1: i32, %arg2: i32) -> (i32, i32) {
    %c0_i32 = arith.constant 0 : i32
    %c0_i32_0 = arith.constant 0 : i32
    return %c0_i32, %arg1 : i32, i32
  }
  func.func @transform_3(%arg0: i32, %arg1: i32, %arg2: i32) -> (i32, i32) {
    %c0_i32 = arith.constant 0 : i32
    return %arg0, %arg1 : i32, i32
  }
}

module attributes {stable_mosaic.version = 11 : i64} {
  func.func @_attention_kernel(%arg0: i32, %arg1: i32, %arg2: i32, %arg3: memref<1x8x32xf32, #tpu.memory_space<vmem>>, %arg4: memref<1x8x32xf32, #tpu.memory_space<vmem>>, %arg5: memref<1x8x32xf32, #tpu.memory_space<vmem>>, %arg6: memref<1x8x32xf32, #tpu.memory_space<vmem>>, %arg7: memref<1x4x8x8xf32, #tpu.memory_space<vmem>>) attributes {dimension_semantics = [#tpu.dimension_semantics<parallel>, #tpu.dimension_semantics<parallel>, #tpu.dimension_semantics<parallel>], iteration_bounds = array<i64: 2, 1, 1>, scalar_prefetch = 0 : i64, scratch_operands = 0 : i64, tpu.core_type = #tpu.core_type<tc>, window_params = [{transform_indices = @transform_0, window_bounds = array<i64: 1, 8, 32>}, {transform_indices = @transform_1, window_bounds = array<i64: 1, 8, 32>}, {transform_indices = @transform_2, window_bounds = array<i64: 1, 8, 32>}, {transform_indices = @transform_3, window_bounds = array<i64: 1, 8, 32>}, {transform_indices = @transform_4, window_bounds = array<i64: 1, 4, 8, 8>}]} {
    %c0 = arith.constant 0 : index
    %c0_0 = arith.constant 0 : index
    %c0_1 = arith.constant 0 : index
    %0 = vector.load %arg3[%c0, %c0_0, %c0_1] : memref<1x8x32xf32, #tpu.memory_space<vmem>>, vector<1x8x32xf32>
    %1 = vector.shape_cast %0 : vector<1x8x32xf32> to vector<8x32xf32>
    %cst = arith.constant 0.353553385 : f32
    %2 = vector.broadcast %cst : f32 to vector<8x32xf32>
    %3 = arith.mulf %1, %2 : vector<8x32xf32>
    %c0_2 = arith.constant 0 : index
    %c0_3 = arith.constant 0 : index
    %c0_4 = arith.constant 0 : index
    %4 = vector.load %arg4[%c0_2, %c0_3, %c0_4] : memref<1x8x32xf32, #tpu.memory_space<vmem>>, vector<1x8x32xf32>
    %5 = vector.shape_cast %4 : vector<1x8x32xf32> to vector<8x32xf32>
    %c0_5 = arith.constant 0 : index
    %c0_6 = arith.constant 0 : index
    %c0_7 = arith.constant 0 : index
    %6 = vector.load %arg5[%c0_5, %c0_6, %c0_7] : memref<1x8x32xf32, #tpu.memory_space<vmem>>, vector<1x8x32xf32>
    %7 = vector.shape_cast %6 : vector<1x8x32xf32> to vector<8x32xf32>
    %8 = vector.extract_strided_slice %3 {offsets = [0, 0], sizes = [8, 8], strides = [1, 1]} : vector<8x32xf32> to vector<8x8xf32>
    %9 = vector.extract_strided_slice %5 {offsets = [0, 0], sizes = [8, 8], strides = [1, 1]} : vector<8x32xf32> to vector<8x8xf32>
    %10 = vector.extract_strided_slice %7 {offsets = [0, 0], sizes = [8, 8], strides = [1, 1]} : vector<8x32xf32> to vector<8x8xf32>
    %cst_8 = arith.constant dense<0.000000e+00> : vector<8x8xf32>
    %11 = tpu.matmul %8, %9, %cst_8 {dimension_numbers = #tpu.dot_dimension_numbers<[1], [1], [0], [0], [0, 0, 1, 0], [], []>} : vector<8x8xf32>, vector<8x8xf32>, vector<8x8xf32> -> vector<8x8xf32>
    %cst_9 = arith.constant dense<0xFF800000> : vector<8xf32>
    %12 = vector.multi_reduction <maximumf>, %11, %cst_9 [1] : vector<8x8xf32> to vector<8xf32>
    %13 = vector.shape_cast %12 : vector<8xf32> to vector<8x1xf32>
    %14 = vector.broadcast %13 : vector<8x1xf32> to vector<8x8xf32>
    %15 = arith.subf %11, %14 : vector<8x8xf32>
    %16 = math.exp %15 : vector<8x8xf32>
    %cst_10 = arith.constant dense<0.000000e+00> : vector<8xf32>
    %17 = vector.multi_reduction <add>, %16, %cst_10 [1] : vector<8x8xf32> to vector<8xf32>
    %18 = vector.shape_cast %17 : vector<8xf32> to vector<8x1xf32>
    %19 = tpu.reciprocal %18 {approx = true} : vector<8x1xf32> -> vector<8x1xf32>
    %20 = vector.broadcast %19 : vector<8x1xf32> to vector<8x8xf32>
    %21 = arith.mulf %16, %20 : vector<8x8xf32>
    %cst_11 = arith.constant dense<0.000000e+00> : vector<8x8xf32>
    %22 = tpu.matmul %21, %10, %cst_11 {dimension_numbers = #tpu.dot_dimension_numbers<[1], [0], [0], [1], [0, 0, 1, 1], [], []>} : vector<8x8xf32>, vector<8x8xf32>, vector<8x8xf32> -> vector<8x8xf32>
    %c0_12 = arith.constant 0 : index
    %c0_13 = arith.constant 0 : index
    %c0_14 = arith.constant 0 : index
    %c0_15 = arith.constant 0 : index
    %23 = vector.load %arg7[%c0_12, %c0_13, %c0_14, %c0_15] : memref<1x4x8x8xf32, #tpu.memory_space<vmem>>, vector<1x1x8x8xf32>
    %24 = vector.shape_cast %23 : vector<1x1x8x8xf32> to vector<8x8xf32>
    %25 = vector.shape_cast %21 : vector<8x8xf32> to vector<1x1x8x8xf32>
    tpu.vector_store %arg7[%c0_12, %c0_13, %c0_14, %c0_15], %25 {strides = array<i32>} : memref<1x4x8x8xf32, #tpu.memory_space<vmem>>, vector<1x1x8x8xf32>,
    %c0_16 = arith.constant 0 : index
    %c0_17 = arith.constant 0 : index
    %c0_18 = arith.constant 0 : index
    %26 = vector.load %arg6[%c0_16, %c0_17, %c0_18] : memref<1x8x32xf32, #tpu.memory_space<vmem>>, vector<1x8x8xf32>
    %27 = vector.shape_cast %26 : vector<1x8x8xf32> to vector<8x8xf32>
    %28 = vector.shape_cast %22 : vector<8x8xf32> to vector<1x8x8xf32>
    tpu.vector_store %arg6[%c0_16, %c0_17, %c0_18], %28 {strides = array<i32>} : memref<1x8x32xf32, #tpu.memory_space<vmem>>, vector<1x8x8xf32>,
    %29 = vector.extract_strided_slice %3 {offsets = [0, 8], sizes = [8, 8], strides = [1, 1]} : vector<8x32xf32> to vector<8x8xf32>
    %30 = vector.extract_strided_slice %5 {offsets = [0, 8], sizes = [8, 8], strides = [1, 1]} : vector<8x32xf32> to vector<8x8xf32>
    %31 = vector.extract_strided_slice %7 {offsets = [0, 8], sizes = [8, 8], strides = [1, 1]} : vector<8x32xf32> to vector<8x8xf32>
    %cst_19 = arith.constant dense<0.000000e+00> : vector<8x8xf32>
    %32 = tpu.matmul %29, %30, %cst_19 {dimension_numbers = #tpu.dot_dimension_numbers<[1], [1], [0], [0], [0, 0, 1, 0], [], []>} : vector<8x8xf32>, vector<8x8xf32>, vector<8x8xf32> -> vector<8x8xf32>
    %cst_20 = arith.constant dense<0xFF800000> : vector<8xf32>
    %33 = vector.multi_reduction <maximumf>, %32, %cst_20 [1] : vector<8x8xf32> to vector<8xf32>
    %34 = vector.shape_cast %33 : vector<8xf32> to vector<8x1xf32>
    %35 = vector.broadcast %34 : vector<8x1xf32> to vector<8x8xf32>
    %36 = arith.subf %32, %35 : vector<8x8xf32>
    %37 = math.exp %36 : vector<8x8xf32>
    %cst_21 = arith.constant dense<0.000000e+00> : vector<8xf32>
    %38 = vector.multi_reduction <add>, %37, %cst_21 [1] : vector<8x8xf32> to vector<8xf32>
    %39 = vector.shape_cast %38 : vector<8xf32> to vector<8x1xf32>
    %40 = tpu.reciprocal %39 {approx = true} : vector<8x1xf32> -> vector<8x1xf32>
    %41 = vector.broadcast %40 : vector<8x1xf32> to vector<8x8xf32>
    %42 = arith.mulf %37, %41 : vector<8x8xf32>
    %cst_22 = arith.constant dense<0.000000e+00> : vector<8x8xf32>
    %43 = tpu.matmul %42, %31, %cst_22 {dimension_numbers = #tpu.dot_dimension_numbers<[1], [0], [0], [1], [0, 0, 1, 1], [], []>} : vector<8x8xf32>, vector<8x8xf32>, vector<8x8xf32> -> vector<8x8xf32>
    %c0_23 = arith.constant 0 : index
    %c1 = arith.constant 1 : index
    %c0_24 = arith.constant 0 : index
    %c0_25 = arith.constant 0 : index
    %44 = vector.load %arg7[%c0_23, %c1, %c0_24, %c0_25] : memref<1x4x8x8xf32, #tpu.memory_space<vmem>>, vector<1x1x8x8xf32>
    %45 = vector.shape_cast %44 : vector<1x1x8x8xf32> to vector<8x8xf32>
    %46 = vector.shape_cast %42 : vector<8x8xf32> to vector<1x1x8x8xf32>
    tpu.vector_store %arg7[%c0_23, %c1, %c0_24, %c0_25], %46 {strides = array<i32>} : memref<1x4x8x8xf32, #tpu.memory_space<vmem>>, vector<1x1x8x8xf32>,
    %c0_26 = arith.constant 0 : index
    %c0_27 = arith.constant 0 : index
    %c8 = arith.constant 8 : index
    %47 = vector.load %arg6[%c0_26, %c0_27, %c8] : memref<1x8x32xf32, #tpu.memory_space<vmem>>, vector<1x8x8xf32>
    %48 = vector.shape_cast %47 : vector<1x8x8xf32> to vector<8x8xf32>
    %49 = vector.shape_cast %43 : vector<8x8xf32> to vector<1x8x8xf32>
    tpu.vector_store %arg6[%c0_26, %c0_27, %c8], %49 {strides = array<i32>} : memref<1x8x32xf32, #tpu.memory_space<vmem>>, vector<1x8x8xf32>,
    %50 = vector.extract_strided_slice %3 {offsets = [0, 16], sizes = [8, 8], strides = [1, 1]} : vector<8x32xf32> to vector<8x8xf32>
    %51 = vector.extract_strided_slice %5 {offsets = [0, 16], sizes = [8, 8], strides = [1, 1]} : vector<8x32xf32> to vector<8x8xf32>
    %52 = vector.extract_strided_slice %7 {offsets = [0, 16], sizes = [8, 8], strides = [1, 1]} : vector<8x32xf32> to vector<8x8xf32>
    %cst_28 = arith.constant dense<0.000000e+00> : vector<8x8xf32>
    %53 = tpu.matmul %50, %51, %cst_28 {dimension_numbers = #tpu.dot_dimension_numbers<[1], [1], [0], [0], [0, 0, 1, 0], [], []>} : vector<8x8xf32>, vector<8x8xf32>, vector<8x8xf32> -> vector<8x8xf32>
    %cst_29 = arith.constant dense<0xFF800000> : vector<8xf32>
    %54 = vector.multi_reduction <maximumf>, %53, %cst_29 [1] : vector<8x8xf32> to vector<8xf32>
    %55 = vector.shape_cast %54 : vector<8xf32> to vector<8x1xf32>
    %56 = vector.broadcast %55 : vector<8x1xf32> to vector<8x8xf32>
    %57 = arith.subf %53, %56 : vector<8x8xf32>
    %58 = math.exp %57 : vector<8x8xf32>
    %cst_30 = arith.constant dense<0.000000e+00> : vector<8xf32>
    %59 = vector.multi_reduction <add>, %58, %cst_30 [1] : vector<8x8xf32> to vector<8xf32>
    %60 = vector.shape_cast %59 : vector<8xf32> to vector<8x1xf32>
    %61 = tpu.reciprocal %60 {approx = true} : vector<8x1xf32> -> vector<8x1xf32>
    %62 = vector.broadcast %61 : vector<8x1xf32> to vector<8x8xf32>
    %63 = arith.mulf %58, %62 : vector<8x8xf32>
    %cst_31 = arith.constant dense<0.000000e+00> : vector<8x8xf32>
    %64 = tpu.matmul %63, %52, %cst_31 {dimension_numbers = #tpu.dot_dimension_numbers<[1], [0], [0], [1], [0, 0, 1, 1], [], []>} : vector<8x8xf32>, vector<8x8xf32>, vector<8x8xf32> -> vector<8x8xf32>
    %c0_32 = arith.constant 0 : index
    %c2 = arith.constant 2 : index
    %c0_33 = arith.constant 0 : index
    %c0_34 = arith.constant 0 : index
    %65 = vector.load %arg7[%c0_32, %c2, %c0_33, %c0_34] : memref<1x4x8x8xf32, #tpu.memory_space<vmem>>, vector<1x1x8x8xf32>
    %66 = vector.shape_cast %65 : vector<1x1x8x8xf32> to vector<8x8xf32>
    %67 = vector.shape_cast %63 : vector<8x8xf32> to vector<1x1x8x8xf32>
    tpu.vector_store %arg7[%c0_32, %c2, %c0_33, %c0_34], %67 {strides = array<i32>} : memref<1x4x8x8xf32, #tpu.memory_space<vmem>>, vector<1x1x8x8xf32>,
    %c0_35 = arith.constant 0 : index
    %c0_36 = arith.constant 0 : index
    %c16 = arith.constant 16 : index
    %68 = vector.load %arg6[%c0_35, %c0_36, %c16] : memref<1x8x32xf32, #tpu.memory_space<vmem>>, vector<1x8x8xf32>
    %69 = vector.shape_cast %68 : vector<1x8x8xf32> to vector<8x8xf32>
    %70 = vector.shape_cast %64 : vector<8x8xf32> to vector<1x8x8xf32>
    tpu.vector_store %arg6[%c0_35, %c0_36, %c16], %70 {strides = array<i32>} : memref<1x8x32xf32, #tpu.memory_space<vmem>>, vector<1x8x8xf32>,
    %71 = vector.extract_strided_slice %3 {offsets = [0, 24], sizes = [8, 8], strides = [1, 1]} : vector<8x32xf32> to vector<8x8xf32>
    %72 = vector.extract_strided_slice %5 {offsets = [0, 24], sizes = [8, 8], strides = [1, 1]} : vector<8x32xf32> to vector<8x8xf32>
    %73 = vector.extract_strided_slice %7 {offsets = [0, 24], sizes = [8, 8], strides = [1, 1]} : vector<8x32xf32> to vector<8x8xf32>
    %cst_37 = arith.constant dense<0.000000e+00> : vector<8x8xf32>
    %74 = tpu.matmul %71, %72, %cst_37 {dimension_numbers = #tpu.dot_dimension_numbers<[1], [1], [0], [0], [0, 0, 1, 0], [], []>} : vector<8x8xf32>, vector<8x8xf32>, vector<8x8xf32> -> vector<8x8xf32>
    %cst_38 = arith.constant dense<0xFF800000> : vector<8xf32>
    %75 = vector.multi_reduction <maximumf>, %74, %cst_38 [1] : vector<8x8xf32> to vector<8xf32>
    %76 = vector.shape_cast %75 : vector<8xf32> to vector<8x1xf32>
    %77 = vector.broadcast %76 : vector<8x1xf32> to vector<8x8xf32>
    %78 = arith.subf %74, %77 : vector<8x8xf32>
    %79 = math.exp %78 : vector<8x8xf32>
    %cst_39 = arith.constant dense<0.000000e+00> : vector<8xf32>
    %80 = vector.multi_reduction <add>, %79, %cst_39 [1] : vector<8x8xf32> to vector<8xf32>
    %81 = vector.shape_cast %80 : vector<8xf32> to vector<8x1xf32>
    %82 = tpu.reciprocal %81 {approx = true} : vector<8x1xf32> -> vector<8x1xf32>
    %83 = vector.broadcast %82 : vector<8x1xf32> to vector<8x8xf32>
    %84 = arith.mulf %79, %83 : vector<8x8xf32>
    %cst_40 = arith.constant dense<0.000000e+00> : vector<8x8xf32>
    %85 = tpu.matmul %84, %73, %cst_40 {dimension_numbers = #tpu.dot_dimension_numbers<[1], [0], [0], [1], [0, 0, 1, 1], [], []>} : vector<8x8xf32>, vector<8x8xf32>, vector<8x8xf32> -> vector<8x8xf32>
    %c0_41 = arith.constant 0 : index
    %c3 = arith.constant 3 : index
    %c0_42 = arith.constant 0 : index
    %c0_43 = arith.constant 0 : index
    %86 = vector.load %arg7[%c0_41, %c3, %c0_42, %c0_43] : memref<1x4x8x8xf32, #tpu.memory_space<vmem>>, vector<1x1x8x8xf32>
    %87 = vector.shape_cast %86 : vector<1x1x8x8xf32> to vector<8x8xf32>
    %88 = vector.shape_cast %84 : vector<8x8xf32> to vector<1x1x8x8xf32>
    tpu.vector_store %arg7[%c0_41, %c3, %c0_42, %c0_43], %88 {strides = array<i32>} : memref<1x4x8x8xf32, #tpu.memory_space<vmem>>, vector<1x1x8x8xf32>,
    %c0_44 = arith.constant 0 : index
    %c0_45 = arith.constant 0 : index
    %c24 = arith.constant 24 : index
    %89 = vector.load %arg6[%c0_44, %c0_45, %c24] : memref<1x8x32xf32, #tpu.memory_space<vmem>>, vector<1x8x8xf32>
    %90 = vector.shape_cast %89 : vector<1x8x8xf32> to vector<8x8xf32>
    %91 = vector.shape_cast %85 : vector<8x8xf32> to vector<1x8x8xf32>
    tpu.vector_store %arg6[%c0_44, %c0_45, %c24], %91 {strides = array<i32>} : memref<1x8x32xf32, #tpu.memory_space<vmem>>, vector<1x8x8xf32>,
    return
  }
  func.func @transform_0(%arg0: i32, %arg1: i32, %arg2: i32) -> (i32, i32, i32) {
    %c0_i32 = arith.constant 0 : i32
    return %arg0, %arg2, %arg1 : i32, i32, i32
  }
  func.func @transform_1(%arg0: i32, %arg1: i32, %arg2: i32) -> (i32, i32, i32) {
    %c0_i32 = arith.constant 0 : i32
    %c0_i32_0 = arith.constant 0 : i32
    return %arg0, %c0_i32, %arg1 : i32, i32, i32
  }
  func.func @transform_2(%arg0: i32, %arg1: i32, %arg2: i32) -> (i32, i32, i32) {
    %c0_i32 = arith.constant 0 : i32
    %c0_i32_0 = arith.constant 0 : i32
    return %arg0, %c0_i32, %arg1 : i32, i32, i32
  }
  func.func @transform_3(%arg0: i32, %arg1: i32, %arg2: i32) -> (i32, i32, i32) {
    %c0_i32 = arith.constant 0 : i32
    return %arg0, %arg2, %arg1 : i32, i32, i32
  }
  func.func @transform_4(%arg0: i32, %arg1: i32, %arg2: i32) -> (i32, i32, i32, i32) {
    %c0_i32 = arith.constant 0 : i32
    %c0_i32_0 = arith.constant 0 : i32
    return %arg0, %arg1, %arg2, %c0_i32 : i32, i32, i32, i32
  }
}

module attributes {stable_mosaic.version = 11 : i64} {
  func.func @_multi_linear_kernel(%arg0: i32, %arg1: i32, %arg2: i32, %arg3: memref<16x32xf32, #tpu.memory_space<vmem>>, %arg4: memref<16x32xf32, #tpu.memory_space<vmem>>, %arg5: memref<16x32xf32, #tpu.memory_space<vmem>>, %arg6: memref<32x32xf32, #tpu.memory_space<vmem>>, %arg7: memref<32x32xf32, #tpu.memory_space<vmem>>, %arg8: memref<32x32xf32, #tpu.memory_space<vmem>>, %arg9: memref<1x32xf32, #tpu.memory_space<vmem>>, %arg10: memref<1x32xf32, #tpu.memory_space<vmem>>, %arg11: memref<1x32xf32, #tpu.memory_space<vmem>>, %arg12: memref<16x32xf32, #tpu.memory_space<vmem>>, %arg13: memref<16x32xf32, #tpu.memory_space<vmem>>, %arg14: memref<16x32xf32, #tpu.memory_space<vmem>>, %arg15: memref<16x32xf32, #tpu.memory_space<vmem>>, %arg16: memref<16x32xf32, #tpu.memory_space<vmem>>, %arg17: memref<16x32xf32, #tpu.memory_space<vmem>>) attributes {dimension_semantics = [#tpu.dimension_semantics<parallel>, #tpu.dimension_semantics<parallel>, #tpu.dimension_semantics<arbitrary>], iteration_bounds = array<i64: 1, 1, 1>, scalar_prefetch = 0 : i64, scratch_operands = 3 : i64, tpu.core_type = #tpu.core_type<tc>, window_params = [{transform_indices = @transform_0, window_bounds = array<i64: 16, 32>}, {transform_indices = @transform_1, window_bounds = array<i64: 16, 32>}, {transform_indices = @transform_2, window_bounds = array<i64: 16, 32>}, {transform_indices = @transform_3, window_bounds = array<i64: 32, 32>}, {transform_indices = @transform_4, window_bounds = array<i64: 32, 32>}, {transform_indices = @transform_5, window_bounds = array<i64: 32, 32>}, {transform_indices = @transform_6, window_bounds = array<i64: 1, 32>}, {transform_indices = @transform_7, window_bounds = array<i64: 1, 32>}, {transform_indices = @transform_8, window_bounds = array<i64: 1, 32>}, {transform_indices = @transform_9, window_bounds = array<i64: 16, 32>}, {transform_indices = @transform_10, window_bounds = array<i64: 16, 32>}, {transform_indices = @transform_11, window_bounds = array<i64: 16, 32>}]} {
    %c0_i32 = arith.constant 0 : i32
    %0 = arith.cmpi eq, %arg2, %c0_i32 : i32
    %1 = arith.extui %0 : i1 to i32
    %c0_i32_0 = arith.constant 0 : i32
    %2 = arith.cmpi ne, %1, %c0_i32_0 : i32
    scf.if %2 {
      %cst_28 = arith.constant 0.000000e+00 : f32
      %24 = vector.broadcast %cst_28 : f32 to vector<16x32xf32>
      %c0_29 = arith.constant 0 : index
      %c0_30 = arith.constant 0 : index
      %25 = vector.load %arg15[%c0_29, %c0_30] : memref<16x32xf32, #tpu.memory_space<vmem>>, vector<16x32xf32>
      tpu.vector_store %arg15[%c0_29, %c0_30], %24 {strides = array<i32>} : memref<16x32xf32, #tpu.memory_space<vmem>>, vector<16x32xf32>,
      %cst_31 = arith.constant 0.000000e+00 : f32
      %26 = vector.broadcast %cst_31 : f32 to vector<16x32xf32>
      %c0_32 = arith.constant 0 : index
      %c0_33 = arith.constant 0 : index
      %27 = vector.load %arg16[%c0_32, %c0_33] : memref<16x32xf32, #tpu.memory_space<vmem>>, vector<16x32xf32>
      tpu.vector_store %arg16[%c0_32, %c0_33], %26 {strides = array<i32>} : memref<16x32xf32, #tpu.memory_space<vmem>>, vector<16x32xf32>,
      %cst_34 = arith.constant 0.000000e+00 : f32
      %28 = vector.broadcast %cst_34 : f32 to vector<16x32xf32>
      %c0_35 = arith.constant 0 : index
      %c0_36 = arith.constant 0 : index
      %29 = vector.load %arg17[%c0_35, %c0_36] : memref<16x32xf32, #tpu.memory_space<vmem>>, vector<16x32xf32>
      tpu.vector_store %arg17[%c0_35, %c0_36], %28 {strides = array<i32>} : memref<16x32xf32, #tpu.memory_space<vmem>>, vector<16x32xf32>,
    } else {
    }
    %c0 = arith.constant 0 : index
    %c0_1 = arith.constant 0 : index
    %3 = vector.load %arg15[%c0, %c0_1] : memref<16x32xf32, #tpu.memory_space<vmem>>, vector<16x32xf32>
    %c0_2 = arith.constant 0 : index
    %c0_3 = arith.constant 0 : index
    %4 = vector.load %arg3[%c0_2, %c0_3] : memref<16x32xf32, #tpu.memory_space<vmem>>, vector<16x32xf32>
    %c0_4 = arith.constant 0 : index
    %c0_5 = arith.constant 0 : index
    %5 = vector.load %arg6[%c0_4, %c0_5] : memref<32x32xf32, #tpu.memory_space<vmem>>, vector<32x32xf32>
    %cst = arith.constant dense<0.000000e+00> : vector<16x32xf32>
    %6 = tpu.matmul %4, %5, %cst {dimension_numbers = #tpu.dot_dimension_numbers<[1], [0], [0], [1], [0, 0, 1, 1], [], []>} : vector<16x32xf32>, vector<32x32xf32>, vector<16x32xf32> -> vector<16x32xf32>
    %7 = arith.addf %3, %6 : vector<16x32xf32>
    %c0_6 = arith.constant 0 : index
    %c0_7 = arith.constant 0 : index
    %8 = vector.load %arg15[%c0_6, %c0_7] : memref<16x32xf32, #tpu.memory_space<vmem>>, vector<16x32xf32>
    tpu.vector_store %arg15[%c0_6, %c0_7], %7 {strides = array<i32>} : memref<16x32xf32, #tpu.memory_space<vmem>>, vector<16x32xf32>,
    %c0_8 = arith.constant 0 : index
    %c0_9 = arith.constant 0 : index
    %9 = vector.load %arg16[%c0_8, %c0_9] : memref<16x32xf32, #tpu.memory_space<vmem>>, vector<16x32xf32>
    %c0_10 = arith.constant 0 : index
    %c0_11 = arith.constant 0 : index
    %10 = vector.load %arg4[%c0_10, %c0_11] : memref<16x32xf32, #tpu.memory_space<vmem>>, vector<16x32xf32>
    %c0_12 = arith.constant 0 : index
    %c0_13 = arith.constant 0 : index
    %11 = vector.load %arg7[%c0_12, %c0_13] : memref<32x32xf32, #tpu.memory_space<vmem>>, vector<32x32xf32>
    %cst_14 = arith.constant dense<0.000000e+00> : vector<16x32xf32>
    %12 = tpu.matmul %10, %11, %cst_14 {dimension_numbers = #tpu.dot_dimension_numbers<[1], [0], [0], [1], [0, 0, 1, 1], [], []>} : vector<16x32xf32>, vector<32x32xf32>, vector<16x32xf32> -> vector<16x32xf32>
    %13 = arith.addf %9, %12 : vector<16x32xf32>
    %c0_15 = arith.constant 0 : index
    %c0_16 = arith.constant 0 : index
    %14 = vector.load %arg16[%c0_15, %c0_16] : memref<16x32xf32, #tpu.memory_space<vmem>>, vector<16x32xf32>
    tpu.vector_store %arg16[%c0_15, %c0_16], %13 {strides = array<i32>} : memref<16x32xf32, #tpu.memory_space<vmem>>, vector<16x32xf32>,
    %c0_17 = arith.constant 0 : index
    %c0_18 = arith.constant 0 : index
    %15 = vector.load %arg17[%c0_17, %c0_18] : memref<16x32xf32, #tpu.memory_space<vmem>>, vector<16x32xf32>
    %c0_19 = arith.constant 0 : index
    %c0_20 = arith.constant 0 : index
    %16 = vector.load %arg5[%c0_19, %c0_20] : memref<16x32xf32, #tpu.memory_space<vmem>>, vector<16x32xf32>
    %c0_21 = arith.constant 0 : index
    %c0_22 = arith.constant 0 : index
    %17 = vector.load %arg8[%c0_21, %c0_22] : memref<32x32xf32, #tpu.memory_space<vmem>>, vector<32x32xf32>
    %cst_23 = arith.constant dense<0.000000e+00> : vector<16x32xf32>
    %18 = tpu.matmul %16, %17, %cst_23 {dimension_numbers = #tpu.dot_dimension_numbers<[1], [0], [0], [1], [0, 0, 1, 1], [], []>} : vector<16x32xf32>, vector<32x32xf32>, vector<16x32xf32> -> vector<16x32xf32>
    %19 = arith.addf %15, %18 : vector<16x32xf32>
    %c0_24 = arith.constant 0 : index
    %c0_25 = arith.constant 0 : index
    %20 = vector.load %arg17[%c0_24, %c0_25] : memref<16x32xf32, #tpu.memory_space<vmem>>, vector<16x32xf32>
    tpu.vector_store %arg17[%c0_24, %c0_25], %19 {strides = array<i32>} : memref<16x32xf32, #tpu.memory_space<vmem>>, vector<16x32xf32>,
    %c0_i32_26 = arith.constant 0 : i32
    %21 = arith.cmpi eq, %arg2, %c0_i32_26 : i32
    %22 = arith.extui %21 : i1 to i32
    %c0_i32_27 = arith.constant 0 : i32
    %23 = arith.cmpi ne, %22, %c0_i32_27 : i32
    scf.if %23 {
      %c0_28 = arith.constant 0 : index
      %c0_29 = arith.constant 0 : index
      %24 = vector.load %arg15[%c0_28, %c0_29] : memref<16x32xf32, #tpu.memory_space<vmem>>, vector<16x32xf32>
      %c0_30 = arith.constant 0 : index
      %c0_31 = arith.constant 0 : index
      %25 = vector.load %arg9[%c0_30, %c0_31] : memref<1x32xf32, #tpu.memory_space<vmem>>, vector<1x32xf32>
      %26 = vector.broadcast %25 : vector<1x32xf32> to vector<16x32xf32>
      %27 = arith.addf %24, %26 : vector<16x32xf32>
      %c0_32 = arith.constant 0 : index
      %c0_33 = arith.constant 0 : index
      %28 = vector.load %arg12[%c0_32, %c0_33] : memref<16x32xf32, #tpu.memory_space<vmem>>, vector<16x32xf32>
      tpu.vector_store %arg12[%c0_32, %c0_33], %27 {strides = array<i32>} : memref<16x32xf32, #tpu.memory_space<vmem>>, vector<16x32xf32>,
      %c0_34 = arith.constant 0 : index
      %c0_35 = arith.constant 0 : index
      %29 = vector.load %arg16[%c0_34, %c0_35] : memref<16x32xf32, #tpu.memory_space<vmem>>, vector<16x32xf32>
      %c0_36 = arith.constant 0 : index
      %c0_37 = arith.constant 0 : index
      %30 = vector.load %arg10[%c0_36, %c0_37] : memref<1x32xf32, #tpu.memory_space<vmem>>, vector<1x32xf32>
      %31 = vector.broadcast %30 : vector<1x32xf32> to vector<16x32xf32>
      %32 = arith.addf %29, %31 : vector<16x32xf32>
      %c0_38 = arith.constant 0 : index
      %c0_39 = arith.constant 0 : index
      %33 = vector.load %arg13[%c0_38, %c0_39] : memref<16x32xf32, #tpu.memory_space<vmem>>, vector<16x32xf32>
      tpu.vector_store %arg13[%c0_38, %c0_39], %32 {strides = array<i32>} : memref<16x32xf32, #tpu.memory_space<vmem>>, vector<16x32xf32>,
      %c0_40 = arith.constant 0 : index
      %c0_41 = arith.constant 0 : index
      %34 = vector.load %arg17[%c0_40, %c0_41] : memref<16x32xf32, #tpu.memory_space<vmem>>, vector<16x32xf32>
      %c0_42 = arith.constant 0 : index
      %c0_43 = arith.constant 0 : index
      %35 = vector.load %arg11[%c0_42, %c0_43] : memref<1x32xf32, #tpu.memory_space<vmem>>, vector<1x32xf32>
      %36 = vector.broadcast %35 : vector<1x32xf32> to vector<16x32xf32>
      %37 = arith.addf %34, %36 : vector<16x32xf32>
      %c0_44 = arith.constant 0 : index
      %c0_45 = arith.constant 0 : index
      %38 = vector.load %arg14[%c0_44, %c0_45] : memref<16x32xf32, #tpu.memory_space<vmem>>, vector<16x32xf32>
      tpu.vector_store %arg14[%c0_44, %c0_45], %37 {strides = array<i32>} : memref<16x32xf32, #tpu.memory_space<vmem>>, vector<16x32xf32>,
    } else {
    }
    return
  }
  func.func @transform_0(%arg0: i32, %arg1: i32, %arg2: i32) -> (i32, i32) {
    %c0_i32 = arith.constant 0 : i32
    return %arg0, %arg2 : i32, i32
  }
  func.func @transform_1(%arg0: i32, %arg1: i32, %arg2: i32) -> (i32, i32) {
    %c0_i32 = arith.constant 0 : i32
    return %arg0, %arg2 : i32, i32
  }
  func.func @transform_2(%arg0: i32, %arg1: i32, %arg2: i32) -> (i32, i32) {
    %c0_i32 = arith.constant 0 : i32
    return %arg0, %arg2 : i32, i32
  }
  func.func @transform_3(%arg0: i32, %arg1: i32, %arg2: i32) -> (i32, i32) {
    %c0_i32 = arith.constant 0 : i32
    return %arg2, %arg1 : i32, i32
  }
  func.func @transform_4(%arg0: i32, %arg1: i32, %arg2: i32) -> (i32, i32) {
    %c0_i32 = arith.constant 0 : i32
    return %arg2, %arg1 : i32, i32
  }
  func.func @transform_5(%arg0: i32, %arg1: i32, %arg2: i32) -> (i32, i32) {
    %c0_i32 = arith.constant 0 : i32
    return %arg2, %arg1 : i32, i32
  }
  func.func @transform_6(%arg0: i32, %arg1: i32, %arg2: i32) -> (i32, i32) {
    %c0_i32 = arith.constant 0 : i32
    %c0_i32_0 = arith.constant 0 : i32
    return %c0_i32, %arg1 : i32, i32
  }
  func.func @transform_7(%arg0: i32, %arg1: i32, %arg2: i32) -> (i32, i32) {
    %c0_i32 = arith.constant 0 : i32
    %c0_i32_0 = arith.constant 0 : i32
    return %c0_i32, %arg1 : i32, i32
  }
  func.func @transform_8(%arg0: i32, %arg1: i32, %arg2: i32) -> (i32, i32) {
    %c0_i32 = arith.constant 0 : i32
    %c0_i32_0 = arith.constant 0 : i32
    return %c0_i32, %arg1 : i32, i32
  }
  func.func @transform_9(%arg0: i32, %arg1: i32, %arg2: i32) -> (i32, i32) {
    %c0_i32 = arith.constant 0 : i32
    return %arg0, %arg1 : i32, i32
  }
  func.func @transform_10(%arg0: i32, %arg1: i32, %arg2: i32) -> (i32, i32) {
    %c0_i32 = arith.constant 0 : i32
    return %arg0, %arg1 : i32, i32
  }
  func.func @transform_11(%arg0: i32, %arg1: i32, %arg2: i32) -> (i32, i32) {
    %c0_i32 = arith.constant 0 : i32
    return %arg0, %arg1 : i32, i32
  }
}

</mosaic_0001>

<bundles_post_ra>
// kernel: cross_attention_forward.5
= control target key start
LH: loop header
LB: loop body
LE: loop exit
PB: predicated region body
PF: predicated region fallthrough
CT: control target
= control target key end

     0   :  { %vm19_vm0 = vcmask 261120   ;;  %v194_v3 = vmov 0.0   ;;  %s250_s0 = inlined_call_operand.vmem [shape: f32[16,32], index: 0, kind: input, shape index: {}]   ;;  %s251_s1 = inlined_call_operand.vmem [shape: f32[32,32], index: 1, kind: input, shape index: {}]   ;;  %s252_s2 = inlined_call_operand.vmem [shape: f32[1,32], index: 2, kind: input, shape index: {}]   ;;  %s253_s3 = inlined_call_operand.hbm [shape: f32[16,32], index: 3, kind: output, shape index: {}]  }
   0x1   :  { %v29_v0 = vld [vmem:[%s251_s1 + $0x18] sm:$0xff]  ;;  %v28_v1 = vld [vmem:[%s251_s1 + $0x10] sm:$0xff]  ;;  %v24_v2 = vld [vmem:[%s250_s0] sm:$0xff]  ;;  %21 = vst.msk [vmem:[#allocation2 + $0x8] sm:$0xff] %vm19_vm0, %v194_v3 }
   0x2   :  { %157 = vmatprep.subr.mxu0 %v29_v0  ;;  %20 = vst.msk [vmem:[#allocation2] sm:$0xff] %vm19_vm0, %v194_v3  ;;  %v27_v4 = vld [vmem:[%s251_s1 + $0x8] sm:$0xff]  ;;  %165 = vmatprep.mubr.msk.f32.mxu0 %vm19_vm0, %v24_v2 }
   0x3   :  { %158 = vmatpush3.msra.mxu0 %v29_v0 }
   0x4   :  { %8 = vsyncpa [#allocation4], 0  ;;  %159 = vmatprep.subr.mxu0 %v28_v1  ;;  %v26_v5 = vld [vmem:[%s251_s1] sm:$0xff]  ;;  %v25_v6 = vld [vmem:[%s250_s0 + $0x8] sm:$0xff]  ;;  %s195_s25 = smov [#allocation3]  }
   0x5   :  { %160 = vmatpush3.msra.mxu0 %v28_v1  ;;  %v150_v13 = vld [vmem:[%s252_s2] ss:$0 sm:$0xff]  ;;  %s137_s0 = sshll.u32 %s195_s25, 4  ;;  %s138_s0 = int_to_ptr.vmem [resolvable:$true] %s137_s0 }
   0x6   :  { %161 = vmatprep.subr.mxu0 %v27_v4  ;;  %s172_s26 = scalar_lea.vmem %s138_s0, 256  ;;  %p177_p1 = scmp.lt.s32.totalorder %s138_s0, %s138_s0 }
   0x7   :  { %162 = vmatpush3.msra.mxu0 %v27_v4  ;;  %p173_p0 = scmp.ne.s32.totalorder %s138_s0, %s172_s26  ;;  %p178_p2 = scmp.lt.s32.totalorder %s172_s26, %s172_s26 }
   0x8   :  { %163 = vmatprep.subr.mxu0 %v26_v5  ;;  %v23_v7 = vld [vmem:[#allocation2 + $0x8] sm:$0xff] }
   0x9   :  { %164 = vmatpush3.msra.mxu0 %v26_v5  ;;  %v22_v9 = vld [vmem:[#allocation2] sm:$0xff]  ;;  %p179_p3 = por %p178_p2, %p177_p1 }
   0xa   :  { %166 = vmatmul.mubr.msk.f32.vlgmr.msra.gmra.mxu0 %vm19_vm0, %v25_v6 }
   0xb   :  { %p180_p4 = pnand %p179_p3, %p173_p0 }
  0xca   :  { %v167_v8 = vpop.f32.mrf.mxu0 }
  0xcb   :  { %v113_v10 = vadd.f32 %v167_v8, %v23_v7 }
  0xcc   :  { %v103_v11 = vpop.f32.mrf.mxu0 }
  0xcd   :  { %115 = vst.msk [vmem:[#allocation2 + $0x8] sm:$0xff] %vm19_vm0, %v113_v10  ;;  %v112_v12 = vadd.f32 %v103_v11, %v22_v9 }
  0xcf   :  { %114 = vst.msk [vmem:[#allocation2] sm:$0xff] %vm19_vm0, %v112_v12 }
  0xd4   :  { %v120_v14 = vld [vmem:[#allocation2 + $0x8] sm:$0xff] }
  0xd5   :  { %v129_v15 = vadd.f32 %v150_v13, %v120_v14 }
  0xd6   :  { %v119_v16 = vld [vmem:[#allocation2] sm:$0xff] }
  0xd7   :  { %v128_v17 = vadd.f32 %v150_v13, %v119_v16  ;;  %131 = vst.msk [vmem:[#allocation3 + $0x8] sm:$0xff] %vm19_vm0, %v129_v15 }
  0xd9   :  { %130 = vst.msk [vmem:[#allocation3] sm:$0xff] %vm19_vm0, %v128_v17 }
  0xda   :  { %183 = shalt.err (!%p180_p4)
}
  0xdb   :  { %s196_s27 = smov 128   ;;  %s197_s2 = smov 8  }
  0xdc   :  { %143 = dma.vmem_to_hbm [thread:$0]  %s138_s0, 256, %s253_s3, [#allocation4], %s196_s27, %s196_s27, %s197_s2  }
  0xdd   :  { %192 = dma.done.wait [#allocation4], 256  }
  0xde   :  { %193 = vsyncadd [#allocation4], 4294967040 }
  0xdf   :  { %147 = vsyncpa [#allocation4], 1 }

// kernel: cross_attention_forward.3
= control target key start
LH: loop header
LB: loop body
LE: loop exit
PB: predicated region body
PF: predicated region fallthrough
CT: control target
= control target key end

     0   :  { %17 = vsyncpa [#allocation6], 0  ;;  %s780_s0 = inlined_call_operand.vmem [shape: f32[16,32], index: 0, kind: input, shape index: {}]   ;;  %s781_s1 = inlined_call_operand.hbm [shape: f32[16,32], index: 1, kind: input, shape index: {}]   ;;  %s782_s2 = inlined_call_operand.hbm [shape: f32[16,32], index: 2, kind: input, shape index: {}]   ;;  %s783_s3 = inlined_call_operand.hbm [shape: f32[32,32], index: 3, kind: input, shape index: {}]   ;;  %s784_s4 = inlined_call_operand.hbm [shape: f32[32,32], index: 4, kind: input, shape index: {}]   ;;  %s785_s5 = inlined_call_operand.hbm [shape: f32[32,32], index: 5, kind: input, shape index: {}]   ;;  %s786_s6 = inlined_call_operand.vmem [shape: f32[1,32], index: 6, kind: input, shape index: {}]   ;;  %s787_s7 = inlined_call_operand.vmem [shape: f32[1,32], index: 7, kind: input, shape index: {}]   ;;  %s788_s8 = inlined_call_operand.vmem [shape: f32[1,32], index: 8, kind: input, shape index: {}]   ;;  %s789_s9 = inlined_call_operand.vmem [shape: f32[16,32], index: 9, kind: output, shape index: {0}]   ;;  %s790_s10 = inlined_call_operand.vmem [shape: f32[16,32], index: 10, kind: output, shape index: {1}]   ;;  %s791_s11 = inlined_call_operand.vmem [shape: f32[16,32], index: 11, kind: output, shape index: {2}]  }
   0x1   :  { %18 = vsyncpa [#allocation8], 0 }
   0x2   :  { %19 = vsyncpa [#allocation11], 0  ;;  %s625_s17 = smov [#allocation7]   ;;  %s626_s19 = smov [#allocation10]  }
   0x3   :  { %s39_s18 = sshll.u32 %s625_s17, 4  ;;  %s63_s20 = sshll.u32 %s626_s19, 4  ;;  %s40_s18 = int_to_ptr.vmem [resolvable:$true] %s39_s18  ;;  %s64_s20 = int_to_ptr.vmem [resolvable:$true] %s63_s20 }
   0x4   :  { %s527_s21 = scalar_lea.vmem %s40_s18, 256  ;;  %p532_p1 = scmp.lt.s32.totalorder %s40_s18, %s40_s18 }
   0x5   :  { %p528_p0 = scmp.ne.s32.totalorder %s40_s18, %s527_s21  ;;  %p533_p2 = scmp.lt.s32.totalorder %s527_s21, %s527_s21 }
   0x7   :  { %p534_p3 = por %p533_p2, %p532_p1 }
   0x9   :  { %p535_p4 = pnand %p534_p3, %p528_p0 }
   0xb   :  { %538 = shalt.err (!%p535_p4)
}
   0xc   :  { %s627_s22 = smov 128   ;;  %s628_s23 = smov 8  }
   0xd   :  { %45 = dma.hbm_to_vmem [thread:$0]  %s782_s2, 256, %s40_s18, [#allocation8], %s627_s22, %s627_s22, %s628_s23  }
   0xe   :  { %s547_s26 = scalar_lea.vmem %s64_s20, 512  ;;  %p552_p6 = scmp.lt.s32.totalorder %s64_s20, %s64_s20 }
   0xf   :  { %p548_p5 = scmp.ne.s32.totalorder %s64_s20, %s547_s26  ;;  %p553_p7 = scmp.lt.s32.totalorder %s547_s26, %s547_s26 }
  0x11   :  { %p554_p8 = por %p553_p7, %p552_p6 }
  0x13   :  { %p555_p9 = pnand %p554_p8, %p548_p5 }
  0x15   :  { %558 = shalt.err (!%p555_p9)
}
  0x16   :  { %69 = dma.hbm_to_vmem [thread:$0]  %s784_s4, 512, %s64_s20, [#allocation11], %s627_s22, %s627_s22, %s628_s23  }
  0x17   :  { %s629_s29 = smov [#allocation5]   ;;  %s630_s12 = smov [#allocation9]  }
  0x18   :  { %s27_s30 = sshll.u32 %s629_s29, 4  ;;  %s51_s13 = sshll.u32 %s630_s12, 4  ;;  %s28_s30 = int_to_ptr.vmem [resolvable:$true] %s27_s30  ;;  %s52_s13 = int_to_ptr.vmem [resolvable:$true] %s51_s13 }
  0x19   :  { %s567_s2 = scalar_lea.vmem %s28_s30, 256  ;;  %p572_p11 = scmp.lt.s32.totalorder %s28_s30, %s28_s30 }
  0x1a   :  { %p568_p10 = scmp.ne.s32.totalorder %s28_s30, %s567_s2  ;;  %p573_p12 = scmp.lt.s32.totalorder %s567_s2, %s567_s2 }
  0x1c   :  { %p574_p13 = por %p573_p12, %p572_p11 }
  0x1e   :  { %p575_p0 = pnand %p574_p13, %p568_p10 }
  0x20   :  { %578 = shalt.err (!%p575_p0)
}
  0x21   :  { %33 = dma.hbm_to_vmem [thread:$0]  %s781_s1, 256, %s28_s30, [#allocation6], %s627_s22, %s627_s22, %s628_s23  }
  0x22   :  { %s587_s4 = scalar_lea.vmem %s52_s13, 512  ;;  %p592_p2 = scmp.lt.s32.totalorder %s52_s13, %s52_s13 }
  0x23   :  { %p588_p1 = scmp.ne.s32.totalorder %s52_s13, %s587_s4  ;;  %p593_p3 = scmp.lt.s32.totalorder %s587_s4, %s587_s4 }
  0x25   :  { %p594_p4 = por %p593_p3, %p592_p2 }
  0x27   :  { %p595_p5 = pnand %p594_p4, %p588_p1 }
  0x29   :  { %598 = shalt.err (!%p595_p5)
}
  0x2a   :  { %57 = dma.hbm_to_vmem [thread:$0]  %s783_s3, 512, %s52_s13, [#allocation8], %s627_s22, %s627_s22, %s628_s23  }
  0x2b   :  { %s631_s18 = smov [#allocation12]  }
  0x2c   :  { %s75_s19 = sshll.u32 %s631_s18, 4  ;;  %s76_s19 = int_to_ptr.vmem [resolvable:$true] %s75_s19 }
  0x2d   :  { %s607_s20 = scalar_lea.vmem %s76_s19, 512  ;;  %p612_p7 = scmp.lt.s32.totalorder %s76_s19, %s76_s19 }
  0x2e   :  { %p608_p6 = scmp.ne.s32.totalorder %s76_s19, %s607_s20  ;;  %p613_p8 = scmp.lt.s32.totalorder %s607_s20, %s607_s20 }
  0x30   :  { %p614_p9 = por %p613_p8, %p612_p7 }
  0x32   :  { %p615_p10 = pnand %p614_p9, %p608_p6 }
  0x34   :  { %618 = shalt.err (!%p615_p10)
}
  0x35   :  { %81 = dma.hbm_to_vmem [thread:$0]  %s785_s5, 512, %s76_s19, [#allocation11], %s627_s22, %s627_s22, %s628_s23  }
  0x36   :  { %619 = dma.done.wait [#allocation6], 256  }
  0x37   :  { %620 = vsyncadd [#allocation6], 4294967040 }
  0x38   :  { %621 = dma.done.wait [#allocation8], 768  }
  0x39   :  { %622 = vsyncadd [#allocation8], 4294966528 }
  0x3a   :  { %623 = dma.done.wait [#allocation11], 1024  }
  0x3b   :  { %624 = vsyncadd [#allocation11], 4294966272  ;;  %vm107_vm0 = vcmask 261120   ;;  %v632_v0 = vmov 0.0   ;;  %v121_v1 = vld [vmem:[#allocation9 + $0x18] sm:$0xff]  ;;  %v120_v2 = vld [vmem:[#allocation9 + $0x10] sm:$0xff] }
  0x3c   :  { %109 = vst.msk [vmem:[#allocation2 + $0x8] sm:$0xff] %vm107_vm0, %v632_v0  ;;  %108 = vst.msk [vmem:[#allocation2] sm:$0xff] %vm107_vm0, %v632_v0  ;;  %478 = vmatprep.subr.mxu0 %v121_v1  ;;  %v215_v3 = vld [vmem:[#allocation10 + $0x18] sm:$0xff]  ;;  %v116_v4 = vld [vmem:[%s780_s0] sm:$0xff] }
  0x3d   :  { %110 = vst.msk [vmem:[#allocation3] sm:$0xff] %vm107_vm0, %v632_v0  ;;  %111 = vst.msk [vmem:[#allocation3 + $0x8] sm:$0xff] %vm107_vm0, %v632_v0  ;;  %479 = vmatpush3.msra.mxu0 %v121_v1  ;;  %v119_v5 = vld [vmem:[#allocation9 + $0x8] sm:$0xff]  ;;  %489 = vmatprep.subr.mxu1 %v215_v3  ;;  %v214_v6 = vld [vmem:[#allocation10 + $0x10] sm:$0xff] }
  0x3e   :  { %112 = vst.msk [vmem:[#allocation4] sm:$0xff] %vm107_vm0, %v632_v0  ;;  %113 = vst.msk [vmem:[#allocation4 + $0x8] sm:$0xff] %vm107_vm0, %v632_v0  ;;  %480 = vmatprep.subr.mxu0 %v120_v2  ;;  %486 = vmatprep.mubr.msk.f32.mxu0 %vm107_vm0, %v116_v4  ;;  %v118_v7 = vld [vmem:[#allocation9] sm:$0xff]  ;;  %v213_v8 = vld [vmem:[#allocation10 + $0x8] sm:$0xff] }
  0x3f   :  { %481 = vmatpush3.msra.mxu0 %v120_v2  ;;  %490 = vmatpush3.msra.mxu1 %v215_v3  ;;  %v117_v9 = vld [vmem:[%s780_s0 + $0x8] sm:$0xff]  ;;  %v212_v11 = vld [vmem:[#allocation10] sm:$0xff]  ;;  %v307_v12 = vld [vmem:[#allocation12 + $0x10] sm:$0xff] }
  0x40   :  { %482 = vmatprep.subr.mxu0 %v119_v5  ;;  %491 = vmatprep.subr.mxu1 %v214_v6  ;;  %v308_v10 = vld [vmem:[#allocation12 + $0x18] sm:$0xff]  ;;  %v210_v13 = vld [vmem:[#allocation5] sm:$0xff]  ;;  %v306_v14 = vld [vmem:[#allocation12 + $0x8] sm:$0xff] }
  0x41   :  { %483 = vmatpush3.msra.mxu0 %v119_v5  ;;  %492 = vmatpush3.msra.mxu1 %v214_v6  ;;  %v211_v15 = vld [vmem:[#allocation5 + $0x8] sm:$0xff]  ;;  %v303_v16 = vld [vmem:[#allocation7] sm:$0xff]  ;;  %v305_v17 = vld [vmem:[#allocation12] sm:$0xff] }
  0x42   :  { %484 = vmatprep.subr.mxu0 %v118_v7  ;;  %493 = vmatprep.subr.mxu1 %v213_v8  ;;  %v304_v18 = vld [vmem:[#allocation7 + $0x8] sm:$0xff]  ;;  %v457_v32 = vld [vmem:[%s786_s6] ss:$0 sm:$0xff] }
  0x43   :  { %485 = vmatpush3.msra.mxu0 %v118_v7  ;;  %494 = vmatpush3.msra.mxu1 %v213_v8  ;;  %v115_v19 = vld [vmem:[#allocation2 + $0x8] sm:$0xff]  ;;  %v114_v21 = vld [vmem:[#allocation2] sm:$0xff] }
  0x44   :  { %487 = vmatmul.mubr.msk.f32.vlgmr.msra.gmra.mxu0 %vm107_vm0, %v117_v9  ;;  %500 = vmatprep.subr.mxu0 %v308_v10  ;;  %v209_v24 = vld [vmem:[#allocation3 + $0x8] sm:$0xff]  ;;  %v208_v27 = vld [vmem:[#allocation3] sm:$0xff]  ;;  %v458_v41 = vld [vmem:[%s787_s7] ss:$0 sm:$0xff] }
  0x45   :  { %501 = vmatpush3.msra.mxu0 %v308_v10  ;;  %495 = vmatprep.subr.mxu1 %v212_v11  ;;  %v302_v30 = vld [vmem:[#allocation4 + $0x8] sm:$0xff]  ;;  %v301_v34 = vld [vmem:[#allocation4] sm:$0xff] }
  0x46   :  { %502 = vmatprep.subr.mxu0 %v307_v12  ;;  %496 = vmatpush3.msra.mxu1 %v212_v11  ;;  %v459_v46 = vld [vmem:[%s788_s8] ss:$0 sm:$0xff] }
  0x47   :  { %503 = vmatpush3.msra.mxu0 %v307_v12  ;;  %497 = vmatprep.mubr.msk.f32.mxu1 %vm107_vm0, %v210_v13 }
  0x48   :  { %504 = vmatprep.subr.mxu0 %v306_v14  ;;  %498 = vmatmul.mubr.msk.f32.vlgmr.msra.gmra.mxu1 %vm107_vm0, %v211_v15 }
  0x49   :  { %505 = vmatpush3.msra.mxu0 %v306_v14  ;;  %508 = vmatprep.mubr.msk.f32.mxu0 %vm107_vm0, %v303_v16 }
  0x4a   :  { %506 = vmatprep.subr.mxu0 %v305_v17 }
  0x4b   :  { %507 = vmatpush3.msra.mxu0 %v305_v17 }
  0x4c   :  { %509 = vmatmul.mubr.msk.f32.vlgmr.msra.gmra.mxu0 %vm107_vm0, %v304_v18 }
 0x104   :  { %v488_v20 = vpop.f32.mrf.mxu0 }
 0x105   :  { %v205_v22 = vadd.f32 %v488_v20, %v115_v19 }
 0x106   :  { %v195_v23 = vpop.f32.mrf.mxu0 }
 0x107   :  { %207 = vst.msk [vmem:[#allocation2 + $0x8] sm:$0xff] %vm107_vm0, %v205_v22  ;;  %v204_v25 = vadd.f32 %v195_v23, %v114_v21 }
 0x108   :  { %v499_v26 = vpop.f32.mrf.mxu1 }
 0x109   :  { %206 = vst.msk [vmem:[#allocation2] sm:$0xff] %vm107_vm0, %v204_v25  ;;  %v298_v28 = vadd.f32 %v499_v26, %v209_v24 }
 0x10a   :  { %v288_v29 = vpop.f32.mrf.mxu1 }
 0x10b   :  { %300 = vst.msk [vmem:[#allocation3 + $0x8] sm:$0xff] %vm107_vm0, %v298_v28  ;;  %v297_v31 = vadd.f32 %v288_v29, %v208_v27 }
 0x10c   :  { %v510_v33 = vpop.f32.mrf.mxu0 }
 0x10d   :  { %299 = vst.msk [vmem:[#allocation3] sm:$0xff] %vm107_vm0, %v297_v31  ;;  %v391_v35 = vadd.f32 %v510_v33, %v302_v30 }
 0x10e   :  { %v398_v36 = vld [vmem:[#allocation2 + $0x8] sm:$0xff]  ;;  %v381_v37 = vpop.f32.mrf.mxu0 }
 0x10f   :  { %v407_v38 = vadd.f32 %v457_v32, %v398_v36  ;;  %393 = vst.msk [vmem:[#allocation4 + $0x8] sm:$0xff] %vm107_vm0, %v391_v35  ;;  %v390_v39 = vadd.f32 %v381_v37, %v301_v34 }
 0x110   :  { %v397_v40 = vld [vmem:[#allocation2] sm:$0xff] }
 0x111   :  { %409 = vst.msk [vmem:[%s789_s9 + $0x8] sm:$0xff] %vm107_vm0, %v407_v38  ;;  %v406_v42 = vadd.f32 %v457_v32, %v397_v40  ;;  %392 = vst.msk [vmem:[#allocation4] sm:$0xff] %vm107_vm0, %v390_v39 }
 0x112   :  { %v411_v43 = vld [vmem:[#allocation3 + $0x8] sm:$0xff] }
 0x113   :  { %408 = vst.msk [vmem:[%s789_s9] sm:$0xff] %vm107_vm0, %v406_v42  ;;  %v420_v44 = vadd.f32 %v458_v41, %v411_v43 }
 0x114   :  { %v410_v45 = vld [vmem:[#allocation3] sm:$0xff] }
 0x115   :  { %422 = vst.msk [vmem:[%s790_s10 + $0x8] sm:$0xff] %vm107_vm0, %v420_v44  ;;  %v419_v47 = vadd.f32 %v458_v41, %v410_v45 }
 0x116   :  { %v424_v48 = vld [vmem:[#allocation4 + $0x8] sm:$0xff] }
 0x117   :  { %421 = vst.msk [vmem:[%s790_s10] sm:$0xff] %vm107_vm0, %v419_v47  ;;  %v433_v49 = vadd.f32 %v459_v46, %v424_v48 }
 0x118   :  { %v423_v50 = vld [vmem:[#allocation4] sm:$0xff] }
 0x119   :  { %435 = vst.msk [vmem:[%s791_s11 + $0x8] sm:$0xff] %vm107_vm0, %v433_v49  ;;  %v432_v51 = vadd.f32 %v459_v46, %v423_v50 }
 0x11b   :  { %434 = vst.msk [vmem:[%s791_s11] sm:$0xff] %vm107_vm0, %v432_v51 }
 0x11c   :  { %448 = vsyncpa [#allocation6], 1 }
 0x11d   :  { %449 = vsyncpa [#allocation8], 1 }
 0x11e   :  { %450 = vsyncpa [#allocation11], 1 }

// kernel: cross_attention_forward.4
= control target key start
LH: loop header
LB: loop body
LE: loop exit
PB: predicated region body
PF: predicated region fallthrough
CT: control target
= control target key end

     0   :  { %10 = vsyncpa [#allocation3], 0  ;;  %s1682_s0 = inlined_call_operand.vmem [shape: f32[2,8,32], index: 0, kind: input, shape index: {}]   ;;  %s1683_s1 = inlined_call_operand.vmem [shape: f32[2,8,32], index: 1, kind: input, shape index: {}]   ;;  %s1684_s2 = inlined_call_operand.vmem [shape: f32[2,8,32], index: 2, kind: input, shape index: {}]   ;;  %s1685_s3 = inlined_call_operand.vmem [shape: f32[2,8,32], index: 3, kind: output, shape index: {0}]   ;;  %s1686_s4 = inlined_call_operand.hbm [shape: f32[2,4,8,8], index: 4, kind: output, shape index: {1}]  }
   0x1   :  { %12 = vsyncpa [#allocation3 + $0x1], 0  ;;  %s1470_s15 = smov 0   ;;  %s1472_s16 = smov 0  }
   0x2   :  { %s1474_s17 = smov 0   ;;  %s1476_s18 = smov 0  }
   0x3   :  { %s1478_s19 = smov 0   ;;  %s1480_s20 = smov 0  }
   0x4 LB: > { %s1190_s21 = sadd.s32 4294967295, %s1433_s20   ;;  %s1191_s22 = sadd.s32 4294967294, %s1433_s20   ;;  %s1433_s20 = sphi %s1480_s20, %s18_s20   ;;  %s1429_s19 = sphi %s1478_s19, %s1693_s19   ;;  %s1425_s18 = sphi %s1476_s18, %s1692_s18   ;;  %s1421_s17 = sphi %s1474_s17, %s1691_s17   ;;  %s1417_s16 = sphi %s1472_s16, %s1690_s16   ;;  %s1413_s15 = sphi %s1470_s15, %s1689_s15  }
   0x5   : > { %s37_s23 = sadd.s32 1, %s1429_s19  ;;  %s164_s24 = sadd.s32 1, %s1421_s17 }
   0x6   : > { %p39_p0 = scmp.ge.s32.totalorder %s37_s23, 2  ;;  %p174_p1 = scmp.ne.s32.totalorder %s1421_s17, %s1417_s16 }
   0x7   : > { %p175_p2 = scmp.eq.s32.totalorder %s1190_s21, 1  ;;  %p180_p3 = scmp.ne.s32.totalorder %s1417_s16, %s1413_s15 }
   0x8   : > { %s1695_s23 = smov (%p39_p0, %s37_s23), 0  ;;  %p181_p5 = scmp.eq.s32.totalorder %s1191_s22, 1 }
   0x9   : > { %p1510_p4 = por %p175_p2, %p174_p1  ;;  %s157_s26 = ssub.s32 %s1429_s19, %s1695_s23 }
   0xa   : > { %p1194_p6 = scmp.ge.s32.totalorder %s1433_s20, 1  ;;  %p162_p7 = scmp.eq.s32.totalorder %s157_s26, 0 }
   0xb   : > { %p1517_p8 = por %p181_p5, %p180_p3  ;;  %p232_p9 = scmp.lt.s32.totalorder %s1433_s20, 3 }
   0xc   : > { %s1523_s28 = scalar_select %p162_p7, %s1421_s17, %s164_s24  }
   0xd   : > { %p233_p10 = pnand %p1194_p6, %p232_p9 }
   0xe   : > { %p287_p11 = scmp.lt.s32.totalorder (!%p233_p10), %s1425_s18, 1  ;;  %s1437_s11 = smov (!%p233_p10), 120  }
   0xf   : > { %236 = sbr.rel (%p233_p10) target bundleno = 1404 (0x57c), region = 32  ;;  %s1438_s12 = smov (!%p233_p10), 112  }
  0x10   : > { %s1439_s13 = smov (!%p233_p10), 104   ;;  %s284_s24 = sand.u32 (!%p233_p10), 1, %s1417_s16  }
  0x11   : > { %s1195_s26 = sshll.u32 (!%p233_p10), %s284_s24, 5  ;;  %s1441_s8 = smov (!%p233_p10), 16  }
  0x12   : > { %s1220_s9 = sshll.u32 (!%p233_p10), %s1425_s18, 9  ;;  %s1633_s14 = scalar_lea.sflag (!%p233_p10), [#allocation3], %s284_s24 }
  0x14   : > { %v1435_v0 = vmov 0.0   ;;  %vm1436_vm0 = vmmov 0   ;;  %s288_s29 = scalar_select %p287_p11, %s1425_s18, 1  ;;  %vm326_vm1 = vcmask 64512  }
  0x15   : > { %1237 = vmatprep.subr.mxu0 %v1435_v0  ;;  %1239 = vmatprep.mubr.msk.f32.mxu0 %vm1436_vm0, %v1435_v0  ;;  %s1442_s18 = smov [#allocation2]  }
  0x16   : > { %1242 = vmatprep.subr.mxu1 %v1435_v0  ;;  %1244 = vmatprep.mubr.msk.f32.mxu1 %vm1436_vm0, %v1435_v0  ;;  %s1533_s30 = sshll.u32 %s288_s29, 3  ;;  %s1568_s29 = scalar_lea.vmem [#allocation2], %s1195_s26 }
  0x17   : > { %s303_s7 = scalar_lea.vmem %s1683_s1, %s1533_s30  ;;  %s296_s10 = scalar_lea.vmem %s1682_s0, %s1533_s30 }
  0x18   : > { %v324_v1 = vld [vmem:[%s303_s7] sm:$0xff]  ;;  %s310_s22 = scalar_lea.vmem %s1684_s2, %s1533_s30  ;;  %s1590_s7 = scalar_lea.vmem %s1685_s3, %s1533_s30 }
  0x19   : > { %v322_v2 = vld [vmem:[%s296_s10] sm:$0xff]  ;;  %1238 = vmatpush3.xpose.msk.msra.mxu0 %vm326_vm1, %v324_v1  ;;  %491 = vrot.lane.b32.xlu1 %v324_v1, %s1437_s11  ;;  %s1440_s30 = smov 8   ;;  %s1039_s10 = sshll.u32 %s1568_s29, 4  ;;  %s1629_s10 = int_to_ptr.vmem [resolvable:$true] %s1039_s10 }
  0x1a   : > { %v323_v3 = vmul.f32 0.35355338, %v322_v2  ;;  %1252 = vmatprep.subr.mxu0 %v1435_v0  ;;  %v1559_v12 = vld [vmem:[%s310_s22] sm:$0xff]  ;;  %s1357_s21 = scalar_lea.vmem %s1629_s10, 512  ;;  %s1361_s22 = sshll.u32 %s1442_s18, 4  ;;  %s1362_s22 = int_to_ptr.vmem [resolvable:$false] %s1361_s22 }
  0x1b   : > { %1243 = vmatpush3.msra.mxu1 %v1559_v12  ;;  %p1358_p12 = scmp.ne.s32.totalorder %s1629_s10, %s1357_s21  ;;  %s1363_s26 = scalar_lea.vmem %s1362_s22, 1024 }
  0x1c   : > { %1240 = vmatmul.mubr.msk.f32.vlgmr.msra.gmra.mxu0 %vm326_vm1, %v323_v3  ;;  %1247 = vmatprep.subr.mxu1 %v1435_v0  ;;  %p1364_p1 = scmp.lt.s32.totalorder %s1629_s10, %s1362_s22  ;;  %p1365_p2 = scmp.lt.s32.totalorder %s1363_s26, %s1357_s21 }
  0x1d   : > { %1254 = vmatprep.mubr.msk.f32.mxu0 %vm1436_vm0, %v1435_v0  ;;  %489 = vrot.lane.b32.xlu1 %v323_v3, %s1437_s11  ;;  %p1359_p13 = pnand %p1358_p12, %p1510_p4 }
  0x1e   : > { %p1366_p3 = por %p1365_p2, %p1364_p1 }
  0x1f   : > { %p1360_p0 = pneg %p1359_p13 }
  0x21   : > { %663 = vrot.lane.b32.xlu1 %v323_v3, %s1438_s12  ;;  %p1367_p5 = pnand %p1366_p3, %p1360_p0 }
  0x25   : > { %838 = vrot.lane.b32.xlu1 %v324_v1, %s1439_s13 }
  0x29   : > { %836 = vrot.lane.b32.xlu1 %v323_v3, %s1439_s13 }
  0x8b   : > { %v492_v14 = vpop.permute.xlu1 %491 }
  0x8f   : > { %v490_v15 = vpop.permute.xlu1 %489 }
  0x93   : > { %v664_v17 = vpop.permute.xlu1 %663 }
  0x97   : > { %v839_v20 = vpop.permute.xlu1 %838 }
  0x9b   : > { %v837_v21 = vpop.permute.xlu1 %836 }
  0xdc   : > { %v399_v4 = vpop.f32.mrf.mxu0 }
  0xdd   : > { %v403_v5 = vsel %vm326_vm1, %v399_v4, -inf }
  0xde   : > { %404 = vmax.xlane.f32.xlu0 %v403_v5  ;;  %v1241_v6 = vpop.f32.mrf.mxu0 }
 0x167   : > { %v405_v7 = vpop.xlane.xlu0 %404 }
 0x168   : > { %v406_v8 = vsub.f32 %v399_v4, %v405_v7 }
 0x16a   : > { %v407_v9 = vmul.f32 1.442695, %v406_v8 }
 0x16c   : > { %1341 = vpow2.f32 %v407_v9 }
 0x179   : > { %v1342_v10 = vpop.eup %1341 }
 0x17a   : > { %v409_v11 = vsel %vm326_vm1, %v1342_v10, 0.0 }
 0x17b   : > { %410 = vadd.xlane.f32.xlu0 %v409_v11 }
 0x191   : > { %665 = vrot.lane.b32.xlu0 %v324_v1, %s1438_s12 }
 0x204   : > { %v411_v13 = vpop.xlane.xlu0 %410 }
 0x205   : > { %1343 = vrcp.f32 %v411_v13 }
 0x208   : > { %v666_v19 = vpop.permute.xlu0 %665 }
 0x212   : > { %v1344_v16 = vpop.eup %1343 }
 0x213   : > { %v413_v18 = vmul.f32 %v1344_v16, %v1342_v10 }
 0x215   : > { %1245 = vmatmul.mubr.msk.f32.vlgmr.msra.gmra.mxu1 %vm326_vm1, %v413_v18  ;;  %487 = vst.msk [vmem:[%s1568_s29] sm:$0xff] %vm326_vm1, %v413_v18 }
 0x216   : > { %1248 = vmatpush3.xpose.msk.msra.mxu1 %vm326_vm1, %v492_v14  ;;  %1249 = vmatprep.mubr.msk.f32.mxu1 %vm1436_vm0, %v1435_v0 }
 0x217   : > { %1257 = vmatprep.subr.mxu1 %v1435_v0 }
 0x219   : > { %1250 = vmatmul.mubr.msk.f32.vlgmr.msra.gmra.mxu1 %vm326_vm1, %v490_v15 }
 0x21a   : > { %1258 = vmatpush3.xpose.msk.msra.mxu1 %vm326_vm1, %v666_v19  ;;  %1259 = vmatprep.mubr.msk.f32.mxu1 %vm1436_vm0, %v1435_v0 }
 0x21b   : > { %1267 = vmatprep.subr.mxu1 %v1435_v0 }
 0x21d   : > { %1260 = vmatmul.mubr.msk.f32.vlgmr.msra.gmra.mxu1 %vm326_vm1, %v664_v17 }
 0x21e   : > { %1268 = vmatpush3.xpose.msk.msra.mxu1 %vm326_vm1, %v839_v20  ;;  %1269 = vmatprep.mubr.msk.f32.mxu1 %vm1436_vm0, %v1435_v0 }
 0x221   : > { %1270 = vmatmul.mubr.msk.f32.vlgmr.msra.gmra.mxu1 %vm326_vm1, %v837_v21 }
 0x2d5   : > { %v483_v22 = vpop.f32.mrf.mxu1 }
 0x2d6   : > { %488 = vst.msk [vmem:[%s1590_s7] sm:$0xff] %vm326_vm1, %v483_v22 }
 0x2d7   : > { %v1246_v23 = vpop.f32.mrf.mxu1 }
 0x2d9   : > { %v563_v24 = vpop.f32.mrf.mxu1 }
 0x2da   : > { %v567_v25 = vsel %vm326_vm1, %v563_v24, -inf }
 0x2db   : > { %568 = vmax.xlane.f32.xlu1 %v567_v25  ;;  %v1251_v26 = vpop.f32.mrf.mxu1 }
 0x2dd   : > { %v737_v27 = vpop.f32.mrf.mxu1 }
 0x2de   : > { %v741_v28 = vsel %vm326_vm1, %v737_v27, -inf }
 0x2df   : > { %742 = vmax.xlane.f32.xlu0 %v741_v28  ;;  %v1261_v29 = vpop.f32.mrf.mxu1 }
 0x2e1   : > { %v910_v30 = vpop.f32.mrf.mxu1 }
 0x2e2   : > { %v914_v31 = vsel %vm326_vm1, %v910_v30, -inf }
 0x2e3   : > { %915 = vmax.xlane.f32.xlu1 %v914_v31  ;;  %v1271_v32 = vpop.f32.mrf.mxu1 }
 0x364   : > { %v569_v33 = vpop.xlane.xlu1 %568 }
 0x365   : > { %v570_v34 = vsub.f32 %v563_v24, %v569_v33 }
 0x367   : > { %v571_v35 = vmul.f32 1.442695, %v570_v34 }
 0x368   : > { %v743_v36 = vpop.xlane.xlu0 %742 }
 0x369   : > { %1345 = vpow2.f32 %v571_v35  ;;  %v744_v37 = vsub.f32 %v737_v27, %v743_v36 }
 0x36b   : > { %v745_v38 = vmul.f32 1.442695, %v744_v37 }
 0x36c   : > { %v916_v43 = vpop.xlane.xlu1 %915 }
 0x36d   : > { %1347 = vpow2.f32 %v745_v38  ;;  %v917_v44 = vsub.f32 %v910_v30, %v916_v43 }
 0x36f   : > { %v918_v45 = vmul.f32 1.442695, %v917_v44 }
 0x371   : > { %1349 = vpow2.f32 %v918_v45 }
 0x376   : > { %v1346_v39 = vpop.eup %1345 }
 0x377   : > { %v573_v40 = vsel %vm326_vm1, %v1346_v39, 0.0 }
 0x378   : > { %574 = vadd.xlane.f32.xlu1 %v573_v40 }
 0x37a   : > { %v1348_v41 = vpop.eup %1347 }
 0x37b   : > { %v747_v42 = vsel %vm326_vm1, %v1348_v41, 0.0 }
 0x37c   : > { %748 = vadd.xlane.f32.xlu0 %v747_v42 }
 0x37e   : > { %v1350_v46 = vpop.eup %1349 }
 0x37f   : > { %v920_v47 = vsel %vm326_vm1, %v1350_v46, 0.0 }
 0x389   : > { %752 = vrot.lane.b32.xlu1 %v1559_v12, %s1438_s12 }
 0x392   : > { %579 = vrot.lane.b32.xlu0 %v1559_v12, %s1437_s11 }
 0x3ad   : > { %921 = vadd.xlane.f32.xlu1 %v920_v47 }
 0x3be   : > { %925 = vrot.lane.b32.xlu1 %v1559_v12, %s1439_s13  ;;  %s1627_s13 = scalar_lea.hbm %s1686_s4, %s1220_s9 }
 0x401   : > { %v575_v48 = vpop.xlane.xlu1 %574 }
 0x402   : > { %1351 = vrcp.f32 %v575_v48 }
 0x405   : > { %v749_v49 = vpop.xlane.xlu0 %748  ;;  %v753_v53 = vpop.permute.xlu1 %752 }
 0x406   : > { %1353 = vrcp.f32 %v749_v49 }
 0x409   : > { %v580_v50 = vpop.permute.xlu0 %579 }
 0x40a   : > { %1253 = vmatpush3.msra.mxu0 %v580_v50 }
 0x40b   : > { %1262 = vmatprep.subr.mxu0 %v1435_v0 }
 0x40f   : > { %v1352_v51 = vpop.eup %1351 }
 0x410   : > { %v577_v52 = vmul.f32 %v1352_v51, %v1346_v39 }
 0x412   : > { %1255 = vmatmul.mubr.msk.f32.vlgmr.msra.gmra.mxu0 %vm326_vm1, %v577_v52  ;;  %1206 = vst.msk [vmem:[%s1568_s29 + $0x8] sm:$0xff] %vm326_vm1, %v577_v52 }
 0x413   : > { %v1354_v54 = vpop.eup %1353  ;;  %1263 = vmatpush3.msra.mxu0 %v753_v53  ;;  %1264 = vmatprep.mubr.msk.f32.mxu0 %vm1436_vm0, %v1435_v0 }
 0x414   : > { %v751_v55 = vmul.f32 %v1354_v54, %v1348_v41  ;;  %1272 = vmatprep.subr.mxu0 %v1435_v0 }
 0x416   : > { %1265 = vmatmul.mubr.msk.f32.vlgmr.msra.gmra.mxu0 %vm326_vm1, %v751_v55  ;;  %1210 = vst.msk [vmem:[%s1568_s29 + $0x10] sm:$0xff] %vm326_vm1, %v751_v55 }
 0x417   : > { %1274 = vmatprep.mubr.msk.f32.mxu0 %vm1436_vm0, %v1435_v0 }
 0x436   : > { %v922_v56 = vpop.xlane.xlu1 %921 }
 0x437   : > { %1355 = vrcp.f32 %v922_v56 }
 0x43a   : > { %v926_v57 = vpop.permute.xlu1 %925 }
 0x43b   : > { %1273 = vmatpush3.msra.mxu0 %v926_v57 }
 0x444   : > { %v1356_v58 = vpop.eup %1355 }
 0x445   : > { %v924_v59 = vmul.f32 %v1356_v58, %v1350_v46 }
 0x447   : > { %1275 = vmatmul.mubr.msk.f32.vlgmr.msra.gmra.mxu0 %vm326_vm1, %v924_v59  ;;  %1214 = vst.msk [vmem:[%s1568_s29 + $0x18] sm:$0xff] %vm326_vm1, %v924_v59 }
 0x4d2   : > { %v651_v60 = vpop.f32.mrf.mxu0 }
 0x4d3   : > { %658 = vrot.lane.b32.xlu0 %v651_v60, %s1440_s30 }
 0x4d4   : > { %v1256_v61 = vpop.f32.mrf.mxu0 }
 0x4d6   : > { %v824_v62 = vpop.f32.mrf.mxu0 }
 0x4d7   : > { %831 = vrot.lane.b32.xlu1 %v824_v62, %s1441_s8 }
 0x4d8   : > { %v1266_v63 = vpop.f32.mrf.mxu0 }
 0x4d9   : > { %1370 = shalt.err (!%p1367_p5)
}
 0x4da   : > { %s1371_s24 = scalar_lea.hbm %s1627_s13, 512  ;;  %s1375_s6 = scalar_lea.hbm %s1686_s4, 1024 }
 0x4db   : > { %p1372_p6 = scmp.ne.s32.totalorder %s1627_s13, %s1371_s24  ;;  %p1376_p10 = scmp.lt.s32.totalorder %s1627_s13, %s1686_s4 }
 0x4dc   : > { %p1377_p11 = scmp.lt.s32.totalorder %s1375_s6, %s1371_s24 }
 0x4dd   : > { %p1373_p7 = pnand %p1372_p6, %p1510_p4 }
 0x4de   : > { %p1378_p12 = por %p1377_p11, %p1376_p10 }
 0x4df   : > { %p1374_p9 = pneg %p1373_p7 }
 0x4e1   : > { %p1379_p13 = pnand %p1378_p12, %p1374_p9 }
 0x4e3   : > { %1382 = shalt.err (!%p1379_p13)
}
 0x4e4   : > { %s1443_s11 = smov 128   ;;  %s1444_s12 = smov 24   ;;  %vm661_vm2 = vcmask 130112   ;;  %vm834_vm3 = vcmask 195712   ;;  %vm1007_vm4 = vcmask 261312  }
 0x4e5   : > { %1277 = dma.vmem_to_hbm [thread:$0]  (%p1510_p4), %s1629_s10, 512, %s1627_s13, %s1633_s14, %s1443_s11, %s1443_s11, %s1440_s30  }
 0x507   : > { %v997_v0 = vpop.f32.mrf.mxu0 }
 0x508   : > { %1004 = vrot.lane.b32.xlu0 %v997_v0, %s1444_s12 }
 0x509   : > { %v1276_v1 = vpop.f32.mrf.mxu0 }
 0x545   : > { %v659_v2 = vpop.permute.xlu0 %658 }
 0x546   : > { %662 = vst.msk [vmem:[%s1590_s7] sm:$0xff] %vm661_vm2, %v659_v2 }
 0x549   : > { %v832_v3 = vpop.permute.xlu1 %831 }
 0x54a   : > { %835 = vst.msk [vmem:[%s1590_s7] sm:$0xff] %vm834_vm3, %v832_v3 }
 0x57a   : > { %v1005_v4 = vpop.permute.xlu0 %1004 }
 0x57b   : > { %1008 = vst.msk [vmem:[%s1590_s7] sm:$0xff] %vm1007_vm4, %v1005_v4 }
 0x57c PF: > { %p1283_p0 = scmp.ge.s32.totalorder %s1433_s20, 2  ;;  %s1067_s25 = sand.u32 1, %s1413_s15  }
 0x57d   : > { %s1068_s30 = scalar_lea.sflag [#allocation3], %s1067_s25 }
 0x57e   : > { %p1280_p4 = pnand %p1283_p0, %p1517_p8 }
 0x580   : > { %p1281_p1 = pneg %p1280_p4 }
 0x582   : > { %1408 = dma.done.wait (%p1281_p1), %s1068_s30, 512  }
 0x583   : > { %1410 = vsyncadd (%p1281_p1), %s1068_s30, 4294966784  ;;  %s18_s20 = sadd.s32 1, %s1433_s20   ;;  %s1689_s15 = smov %s1417_s16 }
 0x584   : > { %p15_p2 = scmp.ge.s32.totalorder %s18_s20, 4   ;;  %s1690_s16 = smov %s1421_s17 }
 0x585   : > { %s1691_s17 = smov %s1523_s28  ;;  %s1692_s18 = smov %s1429_s19 }
 0x586   : > { %s1693_s19 = smov %s1695_s23  ;;  %17 = sbr.rel (!%p15_p2) target bundleno = 4 (0x4), region = 88 }
 0x58b   :  { %1073 = vsyncpa [#allocation3], 1 }
 0x58c   :  { %1075 = vsyncpa [#allocation3 + $0x1], 1 }

</bundles_post_ra>
